<compile_context>
chip_gen: v7x
topology: tpu7x:2x2x1
jax: 0.10.0
libtpu: 0.0.40
codegen_flags: <defaults>
</compile_context>

<pallas_src>
from functools import partial

import jax
import jax.numpy as jnp
from jax.experimental import pallas as pl
from jax.experimental.pallas import tpu as pltpu


def _round_up(v, m):
    return ((v + m - 1) // m) * m


_MAX_BLOCK_ROWS = 1024  # 1024 rows * 128 lanes * 4 B = 512 KiB per streamed block


def _mlp_elementwise_kernel(params_ref, x_ref, o_ref, *, hidden, in_dim):
    """Elementwise MLP: y = b2 + sum_h w2[h] * relu(b1[h] + sum_k w1[h,k] * x_k).

    params_ref: (hidden*in_dim + 2*hidden + 1,) f32 in SMEM,
                layout [w1 (h-major), b1, w2, b2].
    x_ref:      (in_dim, TB, 128) f32 in VMEM (lane-dense samples per input dim).
    o_ref:      (TB, 128) f32 in VMEM (lane-dense outputs).
    """
    b1_off = hidden * in_dim
    w2_off = b1_off + hidden
    b2_off = w2_off + hidden

    acc = None
    for h in range(hidden):                     # static unroll (hidden is tiny)
        pre = params_ref[h * in_dim] * x_ref[0] + params_ref[b1_off + h]
        for k in range(1, in_dim):              # static unroll (in_dim is tiny)
            pre = pre + params_ref[h * in_dim + k] * x_ref[k]
        term = params_ref[w2_off + h] * jnp.maximum(pre, 0.0)
        acc = term if acc is None else acc + term
    o_ref[...] = acc + params_ref[b2_off]


@jax.jit
def target_network_forward(x, w1, b1, w2, b2):
    """y = relu(x @ W1^T + b1) @ W2^T + b2, returns (B, 1) float32.

    x: (B, in_dim); w1: (hidden, in_dim); b1: (hidden,); w2: (1, hidden); b2: (1,)
    """
    B, in_dim = x.shape
    hidden = w1.shape[0]

    # Pack the tiny parameter vector (16 floats for the default net) -> SMEM.
    params = jnp.concatenate([
        w1.reshape(-1).astype(jnp.float32),
        b1.reshape(-1).astype(jnp.float32),
        w2.reshape(-1).astype(jnp.float32),
        b2.reshape(-1).astype(jnp.float32),
    ])

    # Lane-dense layout: flatten the batch onto (rows, 128) so input and output
    # streams are both full-width with near-zero padding waste.
    rows = max(-(-B // 128), 1)
    rows = _round_up(rows, 8)

    tb = min(_MAX_BLOCK_ROWS, rows)
    if rows >= 16:
        # Guarantee >=2 grid steps so v7x's two TensorCores both get work.
        tb = min(tb, _round_up(-(-rows // 2), 8))
    rows_p = _round_up(rows, tb)
    n_pad = rows_p * 128

    # (B, in_dim) -> (in_dim, rows_p, 128); padded tail samples are zeros
    # (their outputs are finite garbage and sliced off below).
    x_t = jnp.transpose(x.astype(jnp.float32))            # (in_dim, B)
    x_t = jnp.pad(x_t, ((0, 0), (0, n_pad - B)))
    x_lanes = x_t.reshape(in_dim, rows_p, 128)

    grid = (rows_p // tb,)

    # Double-buffered input + output blocks (f32), generous headroom, <=32 MiB.
    vmem_need = 4 * 2 * (in_dim * tb * 128 + tb * 128)
    vmem_limit = int(min(max(8 * vmem_need, 4 * 1024 * 1024), 32 * 1024 * 1024))

    cost = pl.CostEstimate(
        flops=2 * n_pad * hidden * (in_dim + 1),
        transcendentals=0,
        bytes_accessed=4 * (n_pad * in_dim + n_pad + int(params.shape[0])),
    )

    out = pl.pallas_call(
        partial(_mlp_elementwise_kernel, hidden=hidden, in_dim=in_dim),
        out_shape=jax.ShapeDtypeStruct((rows_p, 128), jnp.float32),
        grid=grid,
        in_specs=[
            pl.BlockSpec(memory_space=pltpu.MemorySpace.SMEM),       # params: SMEM scalars
            pl.BlockSpec((in_dim, tb, 128), lambda i: (0, i, 0)),    # x: streamed blocks
        ],
        out_specs=pl.BlockSpec((tb, 128), lambda i: (i, 0)),         # lane-dense output
        compiler_params=pltpu.CompilerParams(
            dimension_semantics=("parallel",),
            vmem_limit_bytes=vmem_limit,
        ),
        cost_estimate=cost,
    )(params, x_lanes)

    # Slim re-slice: padded output is only ~4 B/sample (no 128x inflation).
    return out.reshape(-1)[:B].reshape(B, 1)


def init_params(key, input_dim=1, hidden_dim=5):
    """Deterministic init mimicking nn.Linear's uniform(-1/sqrt(fan_in), 1/sqrt(fan_in))."""
    k1, k2, k3, k4 = jax.random.split(key, 4)
    bound1 = 1.0 / float(max(input_dim, 1)) ** 0.5
    bound2 = 1.0 / float(max(hidden_dim, 1)) ** 0.5
    w1 = jax.random.uniform(k1, (hidden_dim, input_dim), jnp.float32, -bound1, bound1)
    b1 = jax.random.uniform(k2, (hidden_dim,), jnp.float32, -bound1, bound1)
    w2 = jax.random.uniform(k3, (1, hidden_dim), jnp.float32, -bound2, bound2)
    b2 = jax.random.uniform(k4, (1,), jnp.float32, -bound2, bound2)
    return w1, b1, w2, b2


if __name__ == "__main__":
    key = jax.random.PRNGKey(0)
    kx, kx2, kp = jax.random.split(key, 3)

    input_dim, hidden_dim = 1, 5
    w1, b1, w2, b2 = init_params(kp, input_dim, hidden_dim)

    def ref_fn(xx):
        return jnp.maximum(xx @ w1.T + b1, 0.0) @ w2.T + b2

    # Small batch (single grid step, single lane-row tile).
    x_small = jax.random.normal(kx, (8, input_dim), jnp.float32)
    out_small = jax.block_until_ready(target_network_forward(x_small, w1, b1, w2, b2))
    assert out_small.shape == (8, 1)
    assert jnp.allclose(out_small, ref_fn(x_small), atol=1e-5, rtol=1e-5)

    # Larger, non-lane-aligned batch (exercises padding + lane-dense reshape).
    x_big = jax.random.normal(kx2, (1000, input_dim), jnp.float32)
    out_big = jax.block_until_ready(target_network_forward(x_big, w1, b1, w2, b2))
    assert out_big.shape == (1000, 1)
    assert jnp.allclose(out_big, ref_fn(x_big), atol=1e-5, rtol=1e-5)

    print("KERNEL_OK")
</pallas_src>

<mosaic_0001>
module attributes {stable_mosaic.version = 11 : i64} {
  func.func @_mlp_elementwise_kernel(%arg0: i32, %arg1: memref<16xf32, #tpu.memory_space<smem>>, %arg2: memref<1x8x128xf32, #tpu.memory_space<vmem>>, %arg3: memref<8x128xf32, #tpu.memory_space<vmem>>) attributes {dimension_semantics = [#tpu.dimension_semantics<parallel>], iteration_bounds = array<i64: 1>, scalar_prefetch = 0 : i64, scratch_operands = 0 : i64, tpu.core_type = #tpu.core_type<tc>, window_params = [{transform_indices = @transform_0, window_bounds = array<i64: 16>}, {transform_indices = @transform_1, window_bounds = array<i64: 1, 8, 128>}, {transform_indices = @transform_2, window_bounds = array<i64: 8, 128>}]} {
    %c0 = arith.constant 0 : index
    %0 = memref.load %arg1[%c0] : memref<16xf32, #tpu.memory_space<smem>>
    %c0_0 = arith.constant 0 : index
    %c0_1 = arith.constant 0 : index
    %c0_2 = arith.constant 0 : index
    %1 = vector.load %arg2[%c0_0, %c0_1, %c0_2] : memref<1x8x128xf32, #tpu.memory_space<vmem>>, vector<1x8x128xf32>
    %2 = vector.shape_cast %1 : vector<1x8x128xf32> to vector<8x128xf32>
    %3 = vector.broadcast %0 : f32 to vector<8x128xf32>
    %4 = arith.mulf %3, %2 : vector<8x128xf32>
    %c5 = arith.constant 5 : index
    %5 = memref.load %arg1[%c5] : memref<16xf32, #tpu.memory_space<smem>>
    %6 = vector.broadcast %5 : f32 to vector<8x128xf32>
    %7 = arith.addf %4, %6 : vector<8x128xf32>
    %c10 = arith.constant 10 : index
    %8 = memref.load %arg1[%c10] : memref<16xf32, #tpu.memory_space<smem>>
    %cst = arith.constant 0.000000e+00 : f32
    %9 = vector.broadcast %cst : f32 to vector<8x128xf32>
    %10 = arith.maximumf %7, %9 : vector<8x128xf32>
    %11 = vector.broadcast %8 : f32 to vector<8x128xf32>
    %12 = arith.mulf %11, %10 : vector<8x128xf32>
    %c1 = arith.constant 1 : index
    %13 = memref.load %arg1[%c1] : memref<16xf32, #tpu.memory_space<smem>>
    %c0_3 = arith.constant 0 : index
    %c0_4 = arith.constant 0 : index
    %c0_5 = arith.constant 0 : index
    %14 = vector.load %arg2[%c0_3, %c0_4, %c0_5] : memref<1x8x128xf32, #tpu.memory_space<vmem>>, vector<1x8x128xf32>
    %15 = vector.shape_cast %14 : vector<1x8x128xf32> to vector<8x128xf32>
    %16 = vector.broadcast %13 : f32 to vector<8x128xf32>
    %17 = arith.mulf %16, %15 : vector<8x128xf32>
    %c6 = arith.constant 6 : index
    %18 = memref.load %arg1[%c6] : memref<16xf32, #tpu.memory_space<smem>>
    %19 = vector.broadcast %18 : f32 to vector<8x128xf32>
    %20 = arith.addf %17, %19 : vector<8x128xf32>
    %c11 = arith.constant 11 : index
    %21 = memref.load %arg1[%c11] : memref<16xf32, #tpu.memory_space<smem>>
    %cst_6 = arith.constant 0.000000e+00 : f32
    %22 = vector.broadcast %cst_6 : f32 to vector<8x128xf32>
    %23 = arith.maximumf %20, %22 : vector<8x128xf32>
    %24 = vector.broadcast %21 : f32 to vector<8x128xf32>
    %25 = arith.mulf %24, %23 : vector<8x128xf32>
    %26 = arith.addf %12, %25 : vector<8x128xf32>
    %c2 = arith.constant 2 : index
    %27 = memref.load %arg1[%c2] : memref<16xf32, #tpu.memory_space<smem>>
    %c0_7 = arith.constant 0 : index
    %c0_8 = arith.constant 0 : index
    %c0_9 = arith.constant 0 : index
    %28 = vector.load %arg2[%c0_7, %c0_8, %c0_9] : memref<1x8x128xf32, #tpu.memory_space<vmem>>, vector<1x8x128xf32>
    %29 = vector.shape_cast %28 : vector<1x8x128xf32> to vector<8x128xf32>
    %30 = vector.broadcast %27 : f32 to vector<8x128xf32>
    %31 = arith.mulf %30, %29 : vector<8x128xf32>
    %c7 = arith.constant 7 : index
    %32 = memref.load %arg1[%c7] : memref<16xf32, #tpu.memory_space<smem>>
    %33 = vector.broadcast %32 : f32 to vector<8x128xf32>
    %34 = arith.addf %31, %33 : vector<8x128xf32>
    %c12 = arith.constant 12 : index
    %35 = memref.load %arg1[%c12] : memref<16xf32, #tpu.memory_space<smem>>
    %cst_10 = arith.constant 0.000000e+00 : f32
    %36 = vector.broadcast %cst_10 : f32 to vector<8x128xf32>
    %37 = arith.maximumf %34, %36 : vector<8x128xf32>
    %38 = vector.broadcast %35 : f32 to vector<8x128xf32>
    %39 = arith.mulf %38, %37 : vector<8x128xf32>
    %40 = arith.addf %26, %39 : vector<8x128xf32>
    %c3 = arith.constant 3 : index
    %41 = memref.load %arg1[%c3] : memref<16xf32, #tpu.memory_space<smem>>
    %c0_11 = arith.constant 0 : index
    %c0_12 = arith.constant 0 : index
    %c0_13 = arith.constant 0 : index
    %42 = vector.load %arg2[%c0_11, %c0_12, %c0_13] : memref<1x8x128xf32, #tpu.memory_space<vmem>>, vector<1x8x128xf32>
    %43 = vector.shape_cast %42 : vector<1x8x128xf32> to vector<8x128xf32>
    %44 = vector.broadcast %41 : f32 to vector<8x128xf32>
    %45 = arith.mulf %44, %43 : vector<8x128xf32>
    %c8 = arith.constant 8 : index
    %46 = memref.load %arg1[%c8] : memref<16xf32, #tpu.memory_space<smem>>
    %47 = vector.broadcast %46 : f32 to vector<8x128xf32>
    %48 = arith.addf %45, %47 : vector<8x128xf32>
    %c13 = arith.constant 13 : index
    %49 = memref.load %arg1[%c13] : memref<16xf32, #tpu.memory_space<smem>>
    %cst_14 = arith.constant 0.000000e+00 : f32
    %50 = vector.broadcast %cst_14 : f32 to vector<8x128xf32>
    %51 = arith.maximumf %48, %50 : vector<8x128xf32>
    %52 = vector.broadcast %49 : f32 to vector<8x128xf32>
    %53 = arith.mulf %52, %51 : vector<8x128xf32>
    %54 = arith.addf %40, %53 : vector<8x128xf32>
    %c4 = arith.constant 4 : index
    %55 = memref.load %arg1[%c4] : memref<16xf32, #tpu.memory_space<smem>>
    %c0_15 = arith.constant 0 : index
    %c0_16 = arith.constant 0 : index
    %c0_17 = arith.constant 0 : index
    %56 = vector.load %arg2[%c0_15, %c0_16, %c0_17] : memref<1x8x128xf32, #tpu.memory_space<vmem>>, vector<1x8x128xf32>
    %57 = vector.shape_cast %56 : vector<1x8x128xf32> to vector<8x128xf32>
    %58 = vector.broadcast %55 : f32 to vector<8x128xf32>
    %59 = arith.mulf %58, %57 : vector<8x128xf32>
    %c9 = arith.constant 9 : index
    %60 = memref.load %arg1[%c9] : memref<16xf32, #tpu.memory_space<smem>>
    %61 = vector.broadcast %60 : f32 to vector<8x128xf32>
    %62 = arith.addf %59, %61 : vector<8x128xf32>
    %c14 = arith.constant 14 : index
    %63 = memref.load %arg1[%c14] : memref<16xf32, #tpu.memory_space<smem>>
    %cst_18 = arith.constant 0.000000e+00 : f32
    %64 = vector.broadcast %cst_18 : f32 to vector<8x128xf32>
    %65 = arith.maximumf %62, %64 : vector<8x128xf32>
    %66 = vector.broadcast %63 : f32 to vector<8x128xf32>
    %67 = arith.mulf %66, %65 : vector<8x128xf32>
    %68 = arith.addf %54, %67 : vector<8x128xf32>
    %c15 = arith.constant 15 : index
    %69 = memref.load %arg1[%c15] : memref<16xf32, #tpu.memory_space<smem>>
    %70 = vector.broadcast %69 : f32 to vector<8x128xf32>
    %71 = arith.addf %68, %70 : vector<8x128xf32>
    %c0_19 = arith.constant 0 : index
    %c0_20 = arith.constant 0 : index
    %72 = vector.load %arg3[%c0_19, %c0_20] : memref<8x128xf32, #tpu.memory_space<vmem>>, vector<8x128xf32>
    tpu.vector_store %arg3[%c0_19, %c0_20], %71 {strides = array<i32>} : memref<8x128xf32, #tpu.memory_space<vmem>>, vector<8x128xf32>,
    return
  }
  func.func @transform_0(%arg0: i32) -> i32 {
    %c0_i32 = arith.constant 0 : i32
    %c0_i32_0 = arith.constant 0 : i32
    return %c0_i32 : i32
  }
  func.func @transform_1(%arg0: i32) -> (i32, i32, i32) {
    %c0_i32 = arith.constant 0 : i32
    %c0_i32_0 = arith.constant 0 : i32
    %c0_i32_1 = arith.constant 0 : i32
    return %c0_i32, %arg0, %c0_i32_0 : i32, i32, i32
  }
  func.func @transform_2(%arg0: i32) -> (i32, i32) {
    %c0_i32 = arith.constant 0 : i32
    %c0_i32_0 = arith.constant 0 : i32
    return %arg0, %c0_i32 : i32, i32
  }
}

</mosaic_0001>

<bundles_post_ra>
// kernel: target_network_forward.1
= control target key start
LH: loop header
LB: loop body
LE: loop exit
PB: predicated region body
PF: predicated region fallthrough
CT: control target
= control target key end

     0   :  { %7 = vsyncpa [#allocation3], 0  ;;  %s158_s0 = inlined_call_operand.vmem [shape: f32[16], index: 0, kind: input, shape index: {}]   ;;  %s159_s1 = inlined_call_operand.vmem [shape: f32[1,8,128], index: 1, kind: input, shape index: {}]   ;;  %s160_s2 = inlined_call_operand.vmem [shape: f32[8,128], index: 2, kind: output, shape index: {}]  }
   0x1   :  { %s14_s11 = sshll.u32 %s158_s0, 4  ;;  %s15_s11 = int_to_ptr.vmem [resolvable:$true] %s14_s11 }
   0x2   :  { %s104_s12 = scalar_lea.vmem %s15_s11, 16  ;;  %p109_p1 = scmp.lt.s32.totalorder %s15_s11, %s15_s11 }
   0x3   :  { %p105_p0 = scmp.ne.s32.totalorder %s15_s11, %s104_s12  ;;  %p110_p2 = scmp.lt.s32.totalorder %s104_s12, %s104_s12 }
   0x5   :  { %p111_p3 = por %p110_p2, %p109_p1 }
   0x7   :  { %p112_p4 = pnand %p111_p3, %p105_p0 }
   0x9   :  { %115 = shalt.err (!%p112_p4)
}
   0xa   :  { %s118_s13 = smov [#allocation2]  }
   0xb   :  { %17 = dma.vmem_to_smem %s15_s11, 16, %s118_s13, [#allocation3]  }
   0xc   :  { %116 = dma.done.wait [#allocation3], 16  }
   0xd   :  { %117 = vsyncadd [#allocation3], 4294967280 }
   0xe   :  { %23 = sfence }
   0xf   :  { %s24_s14 = sld [smem:[#allocation2]]  ;;  %s88_s15 = sld [smem:[#allocation2 + $0x5]]  ;;  %v25_v0 = vld [vmem:[%s159_s1] sm:$0xff] }
  0x10   :  { %s137_s16 = sld [smem:[#allocation2 + $0xa]]  ;;  %s90_s17 = sld [smem:[#allocation2 + $0x1]] }
  0x11   :  { %s91_s18 = sld [smem:[#allocation2 + $0x6]]  ;;  %s139_s0 = sld [smem:[#allocation2 + $0xb]] }
  0x12   :  { %s93_s19 = sld [smem:[#allocation2 + $0x2]]  ;;  %s94_s20 = sld [smem:[#allocation2 + $0x7]] }
  0x13   :  { %s144_s23 = sld [smem:[#allocation2 + $0xc]]  ;;  %s96_s24 = sld [smem:[#allocation2 + $0x3]] }
  0x14   :  { %s97_s25 = sld [smem:[#allocation2 + $0x8]]  ;;  %s146_s26 = sld [smem:[#allocation2 + $0xd]] }
  0x15   :  { %v26_v1 = vstv %s24_s14  ;;  %v29_v2 = vstv %s88_s15  ;;  %s99_s27 = sld [smem:[#allocation2 + $0x4]]  ;;  %s100_s28 = sld [smem:[#allocation2 + $0x9]] }
  0x16   :  { %v27_v3 = vmul.f32 %v26_v1, %v25_v0  ;;  %v36_v4 = vstv %s90_s17  ;;  %s148_s29 = sld [smem:[#allocation2 + $0xe]]  ;;  %v33_v10 = vstv %s137_s16  ;;  %s102_s1 = sld [smem:[#allocation2 + $0xf]] }
  0x17   :  { %v37_v5 = vmul.f32 %v36_v4, %v25_v0  ;;  %v39_v6 = vstv %s91_s18  ;;  %v43_v15 = vstv %s139_s0 }
  0x18   :  { %v30_v7 = vadd.f32 %v29_v2, %v27_v3  ;;  %v47_v8 = vstv %s93_s19  ;;  %v50_v9 = vstv %s94_s20 }
  0x19   :  { %v40_v11 = vadd.f32 %v39_v6, %v37_v5  ;;  %v48_v12 = vmul.f32 %v47_v8, %v25_v0  ;;  %v58_v13 = vstv %s96_s24  ;;  %v54_v23 = vstv %s144_s23 }
  0x1a   :  { %v32_v14 = vmax.f32 %v30_v7, 0.0  ;;  %v59_v16 = vmul.f32 %v58_v13, %v25_v0  ;;  %v61_v17 = vstv %s97_s25  ;;  %v65_v28 = vstv %s146_s26 }
  0x1b   :  { %v42_v18 = vmax.f32 %v40_v11, 0.0  ;;  %v51_v19 = vadd.f32 %v50_v9, %v48_v12  ;;  %v69_v20 = vstv %s99_s27  ;;  %v72_v21 = vstv %s100_s28 }
  0x1c   :  { %v34_v22 = vmul.f32 %v33_v10, %v32_v14  ;;  %v62_v24 = vadd.f32 %v61_v17, %v59_v16  ;;  %v70_v25 = vmul.f32 %v69_v20, %v25_v0  ;;  %v76_v33 = vstv %s148_s29 }
  0x1d   :  { %v44_v26 = vmul.f32 %v43_v15, %v42_v18  ;;  %v53_v27 = vmax.f32 %v51_v19, 0.0  ;;  %v80_v39 = vstv %s102_s1 }
  0x1e   :  { %v64_v29 = vmax.f32 %v62_v24, 0.0  ;;  %v73_v30 = vadd.f32 %v72_v21, %v70_v25 }
  0x1f   :  { %v45_v31 = vadd.f32 %v44_v26, %v34_v22  ;;  %v55_v32 = vmul.f32 %v54_v23, %v53_v27 }
  0x20   :  { %v66_v34 = vmul.f32 %v65_v28, %v64_v29  ;;  %v75_v35 = vmax.f32 %v73_v30, 0.0 }
  0x21   :  { %v56_v36 = vadd.f32 %v55_v32, %v45_v31 }
  0x22   :  { %v77_v37 = vmul.f32 %v76_v33, %v75_v35 }
  0x23   :  { %v67_v38 = vadd.f32 %v66_v34, %v56_v36 }
  0x25   :  { %v78_v40 = vadd.f32 %v77_v37, %v67_v38 }
  0x27   :  { %v81_v41 = vadd.f32 %v80_v39, %v78_v40 }
  0x29   :  { %82 = vst [vmem:[%s160_s2] sm:$0xff] %v81_v41 }
  0x2a   :  { %87 = vsyncpa [#allocation3], 1 }

</bundles_post_ra>
